<compile_context>
chip_gen: v7x
topology: tpu7x:2x2x1
jax: 0.10.0
libtpu: 0.0.40
codegen_flags: <defaults>
</compile_context>

<pallas_src>
import functools
import math

import jax
import jax.numpy as jnp
from jax.experimental import pallas as pl
from jax.experimental.pallas import tpu as pltpu

EPSILON = 1e-5
_NUM_CORES = 2          # leading "parallel" grid axis (2 TCs on v7x)
_MAX_TILE_BYTES = 6 << 20   # v7x-safe cap on the per-input tile


def _cdiv(a, b):
    return -(-a // b)


def _round_up(a, b):
    return _cdiv(a, b) * b


def _dc_sums_kernel(pred_ref, tgt_ref, sp_ref, st_ref, ss_ref, *,
                    rows_total, tile_rows, steps_per_core):
    """Accumulate per-column sums of pred, tgt, tgt^2 into per-core slabs."""
    c = pl.program_id(0)        # core slice (parallel)
    i = pl.program_id(1)        # time tile within the core slice (arbitrary)

    @pl.when(i == 0)
    def _init():
        sp_ref[...] = jnp.zeros_like(sp_ref)
        st_ref[...] = jnp.zeros_like(st_ref)
        ss_ref[...] = jnp.zeros_like(ss_ref)

    # Global (un-clamped) block index and the number of real rows it holds.
    b = c * steps_per_core + i
    valid = rows_total - b * tile_rows

    def accumulate(pred, tgt):
        # (tile_rows, L) -> (tile_rows//8, 8, L), reduce leading axis: pure
        # vreg adds; the final 8-sublane fold happens once in the wrapper.
        l = pred.shape[-1]
        sp_ref[...] += pred.reshape(tile_rows // 8, 8, l).sum(axis=0)
        st_ref[...] += tgt.reshape(tile_rows // 8, 8, l).sum(axis=0)
        ss_ref[...] += (tgt * tgt).reshape(tile_rows // 8, 8, l).sum(axis=0)

    @pl.when(valid >= tile_rows)
    def _full_tile():
        accumulate(pred_ref[...].astype(jnp.float32),
                   tgt_ref[...].astype(jnp.float32))

    @pl.when(valid < tile_rows)
    def _edge_tile():
        # Ragged last tile (or a clamped duplicate step): mask away rows that
        # are BlockSpec edge padding / belong to another block.
        row = jax.lax.broadcasted_iota(jnp.int32, pred_ref.shape, 0)
        keep = row < valid
        pred = jnp.where(keep, pred_ref[...].astype(jnp.float32), 0.0)
        tgt = jnp.where(keep, tgt_ref[...].astype(jnp.float32), 0.0)
        accumulate(pred, tgt)


def dc_loss(output, target, *, target_block_bytes=4 << 20):
    """output, target: arrays of shape (T, ...) (e.g. [seq, batch, channels]).

    Returns the scalar DC loss, matching the PyTorch module.  Inputs stay in
    their native dtype; accumulation is f32 inside the kernel.
    """
    assert output.shape == target.shape
    T = output.shape[0]
    F = int(math.prod(output.shape[1:])) if output.ndim > 1 else 1

    out2d = output.reshape(T, F)          # free (contiguous) reshape
    tgt2d = target.reshape(T, F)

    # ---- Lane packing: fold time into lanes when F is small ----------------
    if F <= 64:
        Fp = 1 << max(F - 1, 0).bit_length()   # next pow2 (divides 128)
        k = 128 // Fp
    else:
        Fp, k = F, 1

    t_pad = (_round_up(T, k) - T) if k > 1 else 0
    f_pad = Fp - F
    if t_pad or f_pad:
        # Single wrapper-side copy (zeros are exact for all three sums).
        # No copy at all when F | 128 and T % k == 0 (the common case).
        out2d = jnp.pad(out2d, ((0, t_pad), (0, f_pad)))
        tgt2d = jnp.pad(tgt2d, ((0, t_pad), (0, f_pad)))

    L = Fp * k                          # kernel lane width (128 or F)
    rows_total = (T + t_pad) // k       # packed rows (real data or zero rows)
    out_p = out2d.reshape(rows_total, L)   # free bitcast reshape
    tgt_p = tgt2d.reshape(rows_total, L)

    # ---- Tiling -------------------------------------------------------------
    itemsize = max(jnp.dtype(out_p.dtype).itemsize,
                   jnp.dtype(tgt_p.dtype).itemsize)
    sublane = max(8, 32 // itemsize)           # 8 f32 / 16 bf16 / 32 int8
    bytes_per_row = L * itemsize
    target_block_bytes = min(int(target_block_bytes), _MAX_TILE_BYTES)
    tile_rows = max(sublane,
                    (target_block_bytes // bytes_per_row) // sublane * sublane)
    tile_rows = min(tile_rows, _round_up(rows_total, sublane))

    steps_total = _cdiv(rows_total, tile_rows)
    steps_per_core = _cdiv(steps_total, _NUM_CORES)
    grid = (_NUM_CORES, steps_per_core)

    def in_map(c, i):
        # Clamp trailing (empty) steps to a valid block; the kernel fully
        # masks their rows, so the duplicate DMA is harmless.
        return (jnp.minimum(c * steps_per_core + i, steps_total - 1), 0)

    kernel = functools.partial(_dc_sums_kernel, rows_total=rows_total,
                               tile_rows=tile_rows,
                               steps_per_core=steps_per_core)

    acc_shape = jax.ShapeDtypeStruct((_NUM_CORES * 8, L), jnp.float32)
    acc_spec = pl.BlockSpec((8, L), lambda c, i: (c, 0))

    tile_bytes = tile_rows * bytes_per_row
    vmem_limit = int(min(max(6 * tile_bytes + (8 << 20), 32 << 20), 56 << 20))

    bytes_accessed = (out_p.size * jnp.dtype(out_p.dtype).itemsize
                      + tgt_p.size * jnp.dtype(tgt_p.dtype).itemsize
                      + 3 * _NUM_CORES * 8 * L * 4)
    cost = pl.CostEstimate(flops=5 * T * F, transcendentals=0,
                           bytes_accessed=bytes_accessed)

    sp, st, ss = pl.pallas_call(
        kernel,
        out_shape=(acc_shape, acc_shape, acc_shape),
        grid_spec=pltpu.PrefetchScalarGridSpec(
            num_scalar_prefetch=0,
            grid=grid,
            in_specs=[
                pl.BlockSpec((tile_rows, L), in_map),
                pl.BlockSpec((tile_rows, L), in_map),
            ],
            out_specs=(acc_spec, acc_spec, acc_spec),
        ),
        compiler_params=pltpu.CompilerParams(
            dimension_semantics=("parallel", "arbitrary"),
            vmem_limit_bytes=vmem_limit),
        cost_estimate=cost,
    )(out_p, tgt_p)

    # ---- Tiny epilogue in plain JAX (fold cores, sublanes, lane groups) -----
    sum_pred = jnp.sum(sp, axis=0)      # (L,)
    sum_tgt = jnp.sum(st, axis=0)
    sum_sq = jnp.sum(ss, axis=0)
    if k > 1:                           # fold the k lane groups back to Fp cols
        sum_pred = sum_pred.reshape(k, Fp).sum(axis=0)
        sum_tgt = sum_tgt.reshape(k, Fp).sum(axis=0)
        sum_sq = sum_sq.reshape(k, Fp).sum(axis=0)

    diff = (sum_tgt - sum_pred) / jnp.float32(T)     # per-column mean diff
    loss = jnp.sum(diff * diff) / jnp.float32(F)     # zero-padded cols add 0
    energy = jnp.sum(sum_sq) / jnp.float32(T * F) + jnp.float32(EPSILON)
    return loss / energy


def _dc_loss_ref(output, target):
    output = output.astype(jnp.float32)
    target = target.astype(jnp.float32)
    T = output.shape[0]
    mean_t = jnp.mean(target.reshape(T, -1), axis=0)
    mean_o = jnp.mean(output.reshape(T, -1), axis=0)
    loss = jnp.mean((mean_t - mean_o) ** 2)
    energy = jnp.mean(target.reshape(T, -1) ** 2) + EPSILON
    return loss / energy


if __name__ == "__main__":
    key = jax.random.PRNGKey(0)
    ks = jax.random.split(key, 10)

    def check(o, t, rtol=1e-5, atol=1e-6, **kw):
        got = jax.block_until_ready(dc_loss(o, t, **kw))
        ref = _dc_loss_ref(o, t)
        assert jnp.allclose(got, ref, rtol=rtol, atol=atol), (got, ref)

    # 1) Module-consistent small shape [seq=16, batch=8, channels=4]:
    #    F=32 lane packing (k=4), copy-free path, ragged (masked) single tile.
    o = jax.random.normal(ks[0], (16, 8, 4), dtype=jnp.float32)
    t = jax.random.normal(ks[1], (16, 8, 4), dtype=jnp.float32)
    check(o, t)

    # 2) F=15 -> feature pad to 16 (k=8); small tiles so both core slices and
    #    multi-step per-core accumulation + a partial last tile are exercised.
    o = jax.random.normal(ks[2], (1000, 3, 5), dtype=jnp.float32)
    t = jax.random.normal(ks[3], (1000, 3, 5), dtype=jnp.float32)
    check(o, t, target_block_bytes=8 * 1024)

    # 3) bf16 inputs stay bf16 in HBM; f32 accumulation inside the kernel.
    o = jax.random.normal(ks[4], (512, 8, 4), dtype=jnp.bfloat16)
    t = jax.random.normal(ks[5], (512, 8, 4), dtype=jnp.bfloat16)
    check(o, t, rtol=1e-2, atol=1e-3, target_block_bytes=16 * 1024)

    # 4) T not a multiple of k -> single combined wrapper pad (2 zero rows).
    o = jax.random.normal(ks[6], (30, 2, 2), dtype=jnp.float32)
    t = jax.random.normal(ks[7], (30, 2, 2), dtype=jnp.float32)
    check(o, t)

    # 5) F > 64 -> unpacked path (lane dim = F, full-extent last block dim).
    o = jax.random.normal(ks[8], (100, 5, 13), dtype=jnp.float32)
    t = jax.random.normal(ks[9], (100, 5, 13), dtype=jnp.float32)
    check(o, t)

    print("KERNEL_OK")
</pallas_src>

<mosaic_0001>
module attributes {stable_mosaic.version = 11 : i64} {
  func.func @_dc_sums_kernel(%arg0: i32, %arg1: i32, %arg2: memref<8x128xf32, #tpu.memory_space<vmem>>, %arg3: memref<8x128xf32, #tpu.memory_space<vmem>>, %arg4: memref<8x128xf32, #tpu.memory_space<vmem>>, %arg5: memref<8x128xf32, #tpu.memory_space<vmem>>, %arg6: memref<8x128xf32, #tpu.memory_space<vmem>>) attributes {dimension_semantics = [#tpu.dimension_semantics<parallel>, #tpu.dimension_semantics<arbitrary>], iteration_bounds = array<i64: 2, 1>, scalar_prefetch = 0 : i64, scratch_operands = 0 : i64, tpu.core_type = #tpu.core_type<tc>, window_params = [{transform_indices = @transform_0, window_bounds = array<i64: 8, 128>}, {transform_indices = @transform_1, window_bounds = array<i64: 8, 128>}, {transform_indices = @transform_2, window_bounds = array<i64: 8, 128>}, {transform_indices = @transform_3, window_bounds = array<i64: 8, 128>}, {transform_indices = @transform_4, window_bounds = array<i64: 8, 128>}]} {
    %c0_i32 = arith.constant 0 : i32
    %0 = arith.cmpi eq, %arg1, %c0_i32 : i32
    %1 = arith.extui %0 : i1 to i32
    %c0_i32_0 = arith.constant 0 : i32
    %2 = arith.cmpi ne, %1, %c0_i32_0 : i32
    scf.if %2 {
      %cst = arith.constant 0.000000e+00 : f32
      %13 = vector.broadcast %cst : f32 to vector<8x128xf32>
      %c0 = arith.constant 0 : index
      %c0_5 = arith.constant 0 : index
      %14 = vector.load %arg4[%c0, %c0_5] : memref<8x128xf32, #tpu.memory_space<vmem>>, vector<8x128xf32>
      tpu.vector_store %arg4[%c0, %c0_5], %13 {strides = array<i32>} : memref<8x128xf32, #tpu.memory_space<vmem>>, vector<8x128xf32>,
      %cst_6 = arith.constant 0.000000e+00 : f32
      %15 = vector.broadcast %cst_6 : f32 to vector<8x128xf32>
      %c0_7 = arith.constant 0 : index
      %c0_8 = arith.constant 0 : index
      %16 = vector.load %arg5[%c0_7, %c0_8] : memref<8x128xf32, #tpu.memory_space<vmem>>, vector<8x128xf32>
      tpu.vector_store %arg5[%c0_7, %c0_8], %15 {strides = array<i32>} : memref<8x128xf32, #tpu.memory_space<vmem>>, vector<8x128xf32>,
      %cst_9 = arith.constant 0.000000e+00 : f32
      %17 = vector.broadcast %cst_9 : f32 to vector<8x128xf32>
      %c0_10 = arith.constant 0 : index
      %c0_11 = arith.constant 0 : index
      %18 = vector.load %arg6[%c0_10, %c0_11] : memref<8x128xf32, #tpu.memory_space<vmem>>, vector<8x128xf32>
      tpu.vector_store %arg6[%c0_10, %c0_11], %17 {strides = array<i32>} : memref<8x128xf32, #tpu.memory_space<vmem>>, vector<8x128xf32>,
    } else {
    }
    %c1_i32 = arith.constant 1 : i32
    %3 = arith.muli %arg0, %c1_i32 : i32
    %4 = arith.addi %3, %arg1 : i32
    %c8_i32 = arith.constant 8 : i32
    %5 = arith.muli %4, %c8_i32 : i32
    %c4_i32 = arith.constant 4 : i32
    %6 = arith.subi %c4_i32, %5 : i32
    %c8_i32_1 = arith.constant 8 : i32
    %7 = arith.cmpi sge, %6, %c8_i32_1 : i32
    %8 = arith.extui %7 : i1 to i32
    %c0_i32_2 = arith.constant 0 : i32
    %9 = arith.cmpi ne, %8, %c0_i32_2 : i32
    scf.if %9 {
      %c0 = arith.constant 0 : index
      %c0_5 = arith.constant 0 : index
      %13 = vector.load %arg2[%c0, %c0_5] : memref<8x128xf32, #tpu.memory_space<vmem>>, vector<8x128xf32>
      %c0_6 = arith.constant 0 : index
      %c0_7 = arith.constant 0 : index
      %14 = vector.load %arg3[%c0_6, %c0_7] : memref<8x128xf32, #tpu.memory_space<vmem>>, vector<8x128xf32>
      %c0_8 = arith.constant 0 : index
      %c0_9 = arith.constant 0 : index
      %15 = vector.load %arg4[%c0_8, %c0_9] : memref<8x128xf32, #tpu.memory_space<vmem>>, vector<8x128xf32>
      %16 = vector.shape_cast %13 : vector<8x128xf32> to vector<1x8x128xf32>
      %cst = arith.constant dense<0.000000e+00> : vector<8x128xf32>
      %17 = vector.multi_reduction <add>, %16, %cst [0] : vector<1x8x128xf32> to vector<8x128xf32>
      %18 = arith.addf %15, %17 : vector<8x128xf32>
      %c0_10 = arith.constant 0 : index
      %c0_11 = arith.constant 0 : index
      %19 = vector.load %arg4[%c0_10, %c0_11] : memref<8x128xf32, #tpu.memory_space<vmem>>, vector<8x128xf32>
      tpu.vector_store %arg4[%c0_10, %c0_11], %18 {strides = array<i32>} : memref<8x128xf32, #tpu.memory_space<vmem>>, vector<8x128xf32>,
      %c0_12 = arith.constant 0 : index
      %c0_13 = arith.constant 0 : index
      %20 = vector.load %arg5[%c0_12, %c0_13] : memref<8x128xf32, #tpu.memory_space<vmem>>, vector<8x128xf32>
      %21 = vector.shape_cast %14 : vector<8x128xf32> to vector<1x8x128xf32>
      %cst_14 = arith.constant dense<0.000000e+00> : vector<8x128xf32>
      %22 = vector.multi_reduction <add>, %21, %cst_14 [0] : vector<1x8x128xf32> to vector<8x128xf32>
      %23 = arith.addf %20, %22 : vector<8x128xf32>
      %c0_15 = arith.constant 0 : index
      %c0_16 = arith.constant 0 : index
      %24 = vector.load %arg5[%c0_15, %c0_16] : memref<8x128xf32, #tpu.memory_space<vmem>>, vector<8x128xf32>
      tpu.vector_store %arg5[%c0_15, %c0_16], %23 {strides = array<i32>} : memref<8x128xf32, #tpu.memory_space<vmem>>, vector<8x128xf32>,
      %c0_17 = arith.constant 0 : index
      %c0_18 = arith.constant 0 : index
      %25 = vector.load %arg6[%c0_17, %c0_18] : memref<8x128xf32, #tpu.memory_space<vmem>>, vector<8x128xf32>
      %26 = arith.mulf %14, %14 : vector<8x128xf32>
      %27 = vector.shape_cast %26 : vector<8x128xf32> to vector<1x8x128xf32>
      %cst_19 = arith.constant dense<0.000000e+00> : vector<8x128xf32>
      %28 = vector.multi_reduction <add>, %27, %cst_19 [0] : vector<1x8x128xf32> to vector<8x128xf32>
      %29 = arith.addf %25, %28 : vector<8x128xf32>
      %c0_20 = arith.constant 0 : index
      %c0_21 = arith.constant 0 : index
      %30 = vector.load %arg6[%c0_20, %c0_21] : memref<8x128xf32, #tpu.memory_space<vmem>>, vector<8x128xf32>
      tpu.vector_store %arg6[%c0_20, %c0_21], %29 {strides = array<i32>} : memref<8x128xf32, #tpu.memory_space<vmem>>, vector<8x128xf32>,
    } else {
    }
    %c8_i32_3 = arith.constant 8 : i32
    %10 = arith.cmpi slt, %6, %c8_i32_3 : i32
    %11 = arith.extui %10 : i1 to i32
    %c0_i32_4 = arith.constant 0 : i32
    %12 = arith.cmpi ne, %11, %c0_i32_4 : i32
    scf.if %12 {
      %13 = tpu.iota {dimensions = array<i32: 0>} : vector<8x128xi32>
      %14 = vector.broadcast %6 : i32 to vector<8x128xi32>
      %15 = arith.cmpi slt, %13, %14 : vector<8x128xi32>
      %c0 = arith.constant 0 : index
      %c0_5 = arith.constant 0 : index
      %16 = vector.load %arg2[%c0, %c0_5] : memref<8x128xf32, #tpu.memory_space<vmem>>, vector<8x128xf32>
      %cst = arith.constant 0.000000e+00 : f32
      %17 = vector.broadcast %cst : f32 to vector<8x128xf32>
      %18 = arith.select %15, %16, %17 : vector<8x128xi1>, vector<8x128xf32>
      %c0_6 = arith.constant 0 : index
      %c0_7 = arith.constant 0 : index
      %19 = vector.load %arg3[%c0_6, %c0_7] : memref<8x128xf32, #tpu.memory_space<vmem>>, vector<8x128xf32>
      %cst_8 = arith.constant 0.000000e+00 : f32
      %20 = vector.broadcast %cst_8 : f32 to vector<8x128xf32>
      %21 = arith.select %15, %19, %20 : vector<8x128xi1>, vector<8x128xf32>
      %c0_9 = arith.constant 0 : index
      %c0_10 = arith.constant 0 : index
      %22 = vector.load %arg4[%c0_9, %c0_10] : memref<8x128xf32, #tpu.memory_space<vmem>>, vector<8x128xf32>
      %23 = vector.shape_cast %18 : vector<8x128xf32> to vector<1x8x128xf32>
      %cst_11 = arith.constant dense<0.000000e+00> : vector<8x128xf32>
      %24 = vector.multi_reduction <add>, %23, %cst_11 [0] : vector<1x8x128xf32> to vector<8x128xf32>
      %25 = arith.addf %22, %24 : vector<8x128xf32>
      %c0_12 = arith.constant 0 : index
      %c0_13 = arith.constant 0 : index
      %26 = vector.load %arg4[%c0_12, %c0_13] : memref<8x128xf32, #tpu.memory_space<vmem>>, vector<8x128xf32>
      tpu.vector_store %arg4[%c0_12, %c0_13], %25 {strides = array<i32>} : memref<8x128xf32, #tpu.memory_space<vmem>>, vector<8x128xf32>,
      %c0_14 = arith.constant 0 : index
      %c0_15 = arith.constant 0 : index
      %27 = vector.load %arg5[%c0_14, %c0_15] : memref<8x128xf32, #tpu.memory_space<vmem>>, vector<8x128xf32>
      %28 = vector.shape_cast %21 : vector<8x128xf32> to vector<1x8x128xf32>
      %cst_16 = arith.constant dense<0.000000e+00> : vector<8x128xf32>
      %29 = vector.multi_reduction <add>, %28, %cst_16 [0] : vector<1x8x128xf32> to vector<8x128xf32>
      %30 = arith.addf %27, %29 : vector<8x128xf32>
      %c0_17 = arith.constant 0 : index
      %c0_18 = arith.constant 0 : index
      %31 = vector.load %arg5[%c0_17, %c0_18] : memref<8x128xf32, #tpu.memory_space<vmem>>, vector<8x128xf32>
      tpu.vector_store %arg5[%c0_17, %c0_18], %30 {strides = array<i32>} : memref<8x128xf32, #tpu.memory_space<vmem>>, vector<8x128xf32>,
      %c0_19 = arith.constant 0 : index
      %c0_20 = arith.constant 0 : index
      %32 = vector.load %arg6[%c0_19, %c0_20] : memref<8x128xf32, #tpu.memory_space<vmem>>, vector<8x128xf32>
      %33 = arith.mulf %21, %21 : vector<8x128xf32>
      %34 = vector.shape_cast %33 : vector<8x128xf32> to vector<1x8x128xf32>
      %cst_21 = arith.constant dense<0.000000e+00> : vector<8x128xf32>
      %35 = vector.multi_reduction <add>, %34, %cst_21 [0] : vector<1x8x128xf32> to vector<8x128xf32>
      %36 = arith.addf %32, %35 : vector<8x128xf32>
      %c0_22 = arith.constant 0 : index
      %c0_23 = arith.constant 0 : index
      %37 = vector.load %arg6[%c0_22, %c0_23] : memref<8x128xf32, #tpu.memory_space<vmem>>, vector<8x128xf32>
      tpu.vector_store %arg6[%c0_22, %c0_23], %36 {strides = array<i32>} : memref<8x128xf32, #tpu.memory_space<vmem>>, vector<8x128xf32>,
    } else {
    }
    return
  }
  func.func @transform_0(%arg0: i32, %arg1: i32) -> (i32, i32) {
    %c1_i32 = arith.constant 1 : i32
    %0 = arith.muli %arg0, %c1_i32 : i32
    %1 = arith.addi %0, %arg1 : i32
    %c0_i32 = arith.constant 0 : i32
    %2 = arith.minsi %1, %c0_i32 : i32
    %c0_i32_0 = arith.constant 0 : i32
    %c0_i32_1 = arith.constant 0 : i32
    return %2, %c0_i32_0 : i32, i32
  }
  func.func @transform_1(%arg0: i32, %arg1: i32) -> (i32, i32) {
    %c1_i32 = arith.constant 1 : i32
    %0 = arith.muli %arg0, %c1_i32 : i32
    %1 = arith.addi %0, %arg1 : i32
    %c0_i32 = arith.constant 0 : i32
    %2 = arith.minsi %1, %c0_i32 : i32
    %c0_i32_0 = arith.constant 0 : i32
    %c0_i32_1 = arith.constant 0 : i32
    return %2, %c0_i32_0 : i32, i32
  }
  func.func @transform_2(%arg0: i32, %arg1: i32) -> (i32, i32) {
    %c0_i32 = arith.constant 0 : i32
    %c0_i32_0 = arith.constant 0 : i32
    return %arg0, %c0_i32 : i32, i32
  }
  func.func @transform_3(%arg0: i32, %arg1: i32) -> (i32, i32) {
    %c0_i32 = arith.constant 0 : i32
    %c0_i32_0 = arith.constant 0 : i32
    return %arg0, %c0_i32 : i32, i32
  }
  func.func @transform_4(%arg0: i32, %arg1: i32) -> (i32, i32) {
    %c0_i32 = arith.constant 0 : i32
    %c0_i32_0 = arith.constant 0 : i32
    return %arg0, %c0_i32 : i32, i32
  }
}

</mosaic_0001>

<bundles_post_ra>
// kernel: tpu_custom_call.1
= control target key start
LH: loop header
LB: loop body
LE: loop exit
PB: predicated region body
PF: predicated region fallthrough
CT: control target
= control target key end

     0   :  { %10 = vsyncpa [#allocation3], 0  ;;  %s1271_s0 = inlined_call_operand.hbm [shape: f32[4,128], index: 0, kind: input, shape index: {}]   ;;  %s1272_s1 = inlined_call_operand.hbm [shape: f32[4,128], index: 1, kind: input, shape index: {}]   ;;  %s1273_s2 = inlined_call_operand.hbm [shape: f32[16,128], index: 2, kind: output, shape index: {0}]   ;;  %s1274_s3 = inlined_call_operand.hbm [shape: f32[16,128], index: 3, kind: output, shape index: {1}]   ;;  %s1275_s4 = inlined_call_operand.hbm [shape: f32[16,128], index: 4, kind: output, shape index: {2}]  }
   0x1   :  { %12 = vsyncpa [#allocation3 + $0x1], 0 }
   0x2   :  { %13 = vsyncpa [#allocation6], 0 }
   0x3   :  { %15 = vsyncpa [#allocation6 + $0x1], 0 }
   0x4   :  { %16 = vsyncpa [#allocation4], 0 }
   0x5   :  { %18 = vsyncpa [#allocation4 + $0x1], 0 }
   0x6   :  { %19 = vsyncpa [#allocation9], 0 }
   0x7   :  { %21 = vsyncpa [#allocation9 + $0x1], 0  ;;  %s987_s15 = smov 0   ;;  %s989_s16 = smov 0  }
   0x8   :  { %s991_s17 = smov 0   ;;  %s993_s18 = smov 0  }
   0x9   :  { %s995_s19 = smov 0   ;;  %s997_s20 = smov 0  }
   0xa   :  { %s999_s21 = smov 0   ;;  %s1001_s22 = smov 0  }
   0xb LB: > { %s1026_s23 = sadd.s32 4294967295, %s950_s22   ;;  %s1277_s24 = sadd.s32 4294967294, %s950_s22   ;;  %s950_s22 = sphi %s1001_s22, %s27_s22   ;;  %s946_s21 = sphi %s999_s21, %s1292_s21   ;;  %s942_s20 = sphi %s997_s20, %s1291_s20   ;;  %s938_s19 = sphi %s995_s19, %s1261_s19   ;;  %s934_s18 = sphi %s993_s18, %s1290_s18   ;;  %s930_s17 = sphi %s991_s17, %s1289_s17   ;;  %s926_s16 = sphi %s989_s16, %s1288_s16   ;;  %s922_s15 = sphi %s987_s15, %s1287_s15  }
   0xc   : > { %s39_s25 = sadd.s32 1, %s946_s21  ;;  %p919_p1 = scmp.ne.s32.totalorder %s938_s19, 0 }
   0xd   : > { %p41_p0 = scmp.ge.s32.totalorder %s39_s25, 2  ;;  %p60_p2 = scmp.eq.s32.totalorder %s950_s22, 0 }
   0xe   : > { %p65_p3 = scmp.ne.s32.totalorder %s938_s19, %s934_s18  ;;  %p66_p5 = scmp.eq.s32.totalorder %s1026_s23, 0 }
   0xf   : > { %s1294_s25 = smov (%p41_p0, %s39_s25), 0  ;;  %p1035_p4 = por %p919_p1, %p60_p2 }
  0x10   : > { %1279 = sst [smem:[#allocation15_spill]] %s1294_s25  ;;  %p1040_p6 = por %p66_p5, %p65_p3 }
  0x11   : > { %s107_s28 = ssub.s32 %s946_s21, %s1294_s25  ;;  %s110_s29 = sadd.s32 1, %s930_s17 }
  0x12   : > { %p108_p7 = scmp.eq.s32.totalorder %s107_s28, 0  ;;  %p120_p8 = scmp.ne.s32.totalorder %s930_s17, %s926_s16 }
  0x13   : > { %p121_p9 = scmp.eq.s32.totalorder %s1026_s23, 1  ;;  %p126_p10 = scmp.ne.s32.totalorder %s926_s16, %s922_s15 }
  0x14   : > { %s1048_s30 = scalar_select %p108_p7, %s930_s17, %s110_s29  }
  0x15   : > { %p127_p11 = scmp.eq.s32.totalorder %s1277_s24, 1  ;;  %p1057_p12 = por %p121_p9, %p120_p8 }
  0x16   : > { %p1276_p0 = scmp.ge.s32.totalorder %s950_s22, 2 }
  0x17   : > { %p1061_p13 = por %p127_p11, %p126_p10 }
  0x18   : > { %195 = sbr.rel (%p1276_p0) target bundleno = 85 (0x55), region = 16 }
  0x1f   : > { %198 = sbr.rel (!%p1035_p4) target bundleno = 58 (0x3a), region = 20 }
  0x26   : > { %212 = vsyncadd [#allocation3], 64  ;;  %s952_s7 = smov [#allocation2]   ;;  %s723_s11 = scalar_lea.hbm %s1271_s0, 64 }
  0x27   : > { %s217_s8 = sshll.u32 %s952_s7, 4  ;;  %p724_p1 = scmp.ne.s32.totalorder %s1271_s0, %s723_s11  ;;  %s218_s8 = int_to_ptr.vmem [resolvable:$true] %s217_s8 }
  0x28   : > { %p729_p2 = scmp.lt.u32.totalorder %s723_s11, %s723_s11  ;;  %p731_p3 = scmp.lt.u32.totalorder %s723_s11, %s1271_s0 }
  0x2a   : > { %p732_p5 = por %p731_p3, %p729_p2 }
  0x2c   : > { %p733_p7 = pnand %p732_p5, %p724_p1 }
  0x2e   : > { %736 = shalt.err (!%p733_p7)
}
  0x2f   : > { %s737_s28 = scalar_lea.vmem %s218_s8, 64  ;;  %s743_s29 = scalar_lea.vmem %s218_s8, 256 }
  0x30   : > { %p738_p8 = scmp.ne.s32.totalorder %s218_s8, %s737_s28  ;;  %p744_p9 = scmp.lt.s32.totalorder %s218_s8, %s218_s8 }
  0x31   : > { %p745_p10 = scmp.lt.s32.totalorder %s743_s29, %s737_s28 }
  0x33   : > { %p746_p11 = por %p745_p10, %p744_p9 }
  0x35   : > { %p747_p0 = pnand %p746_p11, %p738_p8 }
  0x37   : > { %750 = shalt.err (!%p747_p0)
}
  0x38   : > { %s953_s7 = smov 64   ;;  %s954_s9 = smov 4  }
  0x39   : > { %223 = dma.hbm_to_vmem [thread:$0]  %s1271_s0, 64, %s218_s8, [#allocation3], %s953_s7, %s953_s7, %s954_s9  }
  0x3a PF: > { %226 = sbr.rel (!%p1035_p4) target bundleno = 85 (0x55), region = 24 }
  0x41   : > { %240 = vsyncadd [#allocation6], 64  ;;  %s955_s11 = smov [#allocation5]   ;;  %s751_s28 = scalar_lea.hbm %s1272_s1, 64 }
  0x42   : > { %s245_s13 = sshll.u32 %s955_s11, 4  ;;  %p752_p0 = scmp.ne.s32.totalorder %s1272_s1, %s751_s28  ;;  %s246_s13 = int_to_ptr.vmem [resolvable:$true] %s245_s13 }
  0x43   : > { %p757_p1 = scmp.lt.u32.totalorder %s751_s28, %s751_s28  ;;  %p759_p2 = scmp.lt.u32.totalorder %s751_s28, %s1272_s1 }
  0x45   : > { %p760_p3 = por %p759_p2, %p757_p1 }
  0x47   : > { %p761_p5 = pnand %p760_p3, %p752_p0 }
  0x49   : > { %764 = shalt.err (!%p761_p5)
}
  0x4a   : > { %s765_s26 = scalar_lea.vmem %s246_s13, 64  ;;  %s771_s8 = scalar_lea.vmem %s246_s13, 256 }
  0x4b   : > { %p766_p4 = scmp.ne.s32.totalorder %s246_s13, %s765_s26  ;;  %p772_p7 = scmp.lt.s32.totalorder %s246_s13, %s246_s13 }
  0x4c   : > { %p773_p8 = scmp.lt.s32.totalorder %s771_s8, %s765_s26 }
  0x4e   : > { %p774_p9 = por %p773_p8, %p772_p7 }
  0x50   : > { %p775_p10 = pnand %p774_p9, %p766_p4 }
  0x52   : > { %778 = shalt.err (!%p775_p10)
}
  0x53   : > { %s956_s7 = smov 64   ;;  %s957_s9 = smov 4  }
  0x54   : > { %251 = dma.hbm_to_vmem [thread:$0]  %s1272_s1, 64, %s246_s13, [#allocation6], %s956_s7, %s956_s7, %s957_s9  }
  0x55 PF: > { %p608_p11 = scmp.ge.s32.totalorder %s950_s22, 1  ;;  %p253_p0 = scmp.lt.s32.totalorder %s950_s22, 3 }
  0x57   : > { %p254_p1 = pnand %p608_p11, %p253_p0 }
  0x58   : > { %s259_s25 = sand.u32 (!%p254_p1), 1, %s938_s19  }
  0x59   : > { %257 = sbr.rel (%p254_p1) target bundleno = 197 (0xc5), region = 28  ;;  %s609_s11 = sshll.u32 (!%p254_p1), %s259_s25, 3 }
  0x5a   : > { %s260_s14 = scalar_lea.sflag (!%p254_p1), [#allocation3], %s259_s25  ;;  %s1099_s18 = scalar_lea.vmem (!%p254_p1), [#allocation2], %s609_s11 }
  0x60   : > { %900 = dma.done.wait (%p1040_p6), %s260_s14, 128  }
  0x61   : > { %902 = vsyncadd (%p1040_p6), %s260_s14, 4294967168  ;;  %s269_s13 = scalar_lea.sflag [#allocation6], %s259_s25  ;;  %s1105_s28 = scalar_lea.vmem [#allocation5], %s609_s11 }
  0x62   : > { %904 = dma.done.wait (%p1040_p6), %s269_s13, 128  }
  0x63   : > { %906 = vsyncadd (%p1040_p6), %s269_s13, 4294967168  ;;  %s295_s29 = sand.u32 1, %s926_s16   ;;  %s614_s10 = sshll.u32 %s942_s20, 3  ;;  %v958_v0 = vmov 0.0  }
  0x64   : > { %s611_s26 = sshll.u32 %s295_s29, 3  ;;  %s1115_s8 = ssub.s32 4, %s614_s10 }
  0x65   : > { %s1117_s7 = scalar_lea.vmem [#allocation7], %s611_s26  ;;  %s1120_s9 = scalar_lea.vmem [#allocation8], %s611_s26 }
  0x66   : > { %328 = vst [vmem:[%s1117_s7] sm:$0xff] %v958_v0  ;;  %329 = vst [vmem:[%s1120_s9] sm:$0xff] %v958_v0  ;;  %s1123_s27 = scalar_lea.vmem [#allocation10], %s611_s26  ;;  %p615_p6 = scmp.lt.s32.totalorder %s1115_s8, 8 }
  0x67   : > { %330 = vst [vmem:[%s1123_s27] sm:$0xff] %v958_v0  ;;  %v338_v1 = vld [vmem:[%s1099_s18] sm:$0xff] (!%p615_p6)  ;;  %v339_v3 = vld [vmem:[%s1105_s28] sm:$0xff] (!%p615_p6) }
  0x68   : > { %337 = sbr.rel (%p615_p6) target bundleno = 114 (0x72), region = 44  ;;  %v349_v7 = vmul.f32 (!%p615_p6), %v339_v3, %v339_v3 }
  0x6d   : > { %v340_v2 = vld [vmem:[%s1117_s7] sm:$0xff] (!%p615_p6)  ;;  %v344_v5 = vld [vmem:[%s1120_s9] sm:$0xff] (!%p615_p6) }
  0x6e   : > { %v342_v4 = vadd.f32 (!%p615_p6), %v340_v2, %v338_v1  ;;  %v348_v6 = vld [vmem:[%s1123_s27] sm:$0xff] (!%p615_p6)  ;;  %v346_v8 = vadd.f32 (!%p615_p6), %v344_v5, %v339_v3 }
  0x6f   : > { %v351_v9 = vadd.f32 %v349_v7, %v348_v6 }
  0x70   : > { %343 = vst [vmem:[%s1117_s7] sm:$0xff] %v342_v4  ;;  %347 = vst [vmem:[%s1120_s9] sm:$0xff] %v346_v8 }
  0x71   : > { %352 = vst [vmem:[%s1123_s27] sm:$0xff] %v351_v9 }
  0x72 PF: > { %p616_p2 = scmp.ge.s32.totalorder %s1115_s8, 8 }
  0x73   : > { %v357_v10 = vlaneseq (!%p616_p2)  ;;  %v359_v11 = vstv (!%p616_p2), %s1115_s8  ;;  %v361_v13 = vld [vmem:[%s1099_s18] sm:$0xff] (!%p616_p2)  ;;  %v363_v14 = vld [vmem:[%s1105_s28] sm:$0xff] (!%p616_p2) }
  0x74   : > { %356 = sbr.rel (%p616_p2) target bundleno = 126 (0x7e), region = 48 }
  0x75   : > { %v358_v12 = vshrl.u32 (!%p616_p2), %v357_v10, 7 }
  0x77   : > { %v365_v15 = vld [vmem:[%s1117_s7] sm:$0xff] (!%p616_p2)  ;;  %v369_v16 = vld [vmem:[%s1120_s9] sm:$0xff] (!%p616_p2)  ;;  %vm360_vm0 = vcmp.lt.s32.totalorder (!%p616_p2), %v358_v12, %v359_v11 }
  0x78   : > { %v362_v17 = vsel (!%p616_p2), %vm360_vm0, %v361_v13, 0.0  ;;  %v364_v18 = vsel (!%p616_p2), %vm360_vm0, %v363_v14, 0.0  ;;  %v373_v19 = vld [vmem:[%s1123_s27] sm:$0xff] (!%p616_p2) }
  0x79   : > { %v367_v20 = vadd.f32 (!%p616_p2), %v365_v15, %v362_v17  ;;  %v371_v21 = vadd.f32 (!%p616_p2), %v369_v16, %v364_v18  ;;  %v374_v22 = vmul.f32 (!%p616_p2), %v364_v18, %v364_v18 }
  0x7b   : > { %368 = vst [vmem:[%s1117_s7] sm:$0xff] %v367_v20  ;;  %372 = vst [vmem:[%s1120_s9] sm:$0xff] %v371_v21  ;;  %v376_v23 = vadd.f32 %v374_v22, %v373_v19 }
  0x7d   : > { %377 = vst [vmem:[%s1123_s27] sm:$0xff] %v376_v23 }
  0x7e PF: > { %s383_s24 = sand.u32 1, %s1026_s23   ;;  %s1147_s12 = sshll.u32 %s942_s20, 7 }
  0x7f   : > { %s1153_s14 = scalar_lea.hbm %s1274_s3, %s1147_s12  ;;  %s415_s18 = sshll.u32 %s1120_s9, 4  ;;  %s1156_s18 = int_to_ptr.vmem [resolvable:$true] %s415_s18 }
  0x80   : > { %s1162_s10 = scalar_lea.hbm %s1273_s2, %s1147_s12  ;;  %s1164_s20 = scalar_lea.sflag [#allocation9], %s383_s24 }
  0x81   : > { %s779_s23 = scalar_lea.vmem %s1156_s18, 128  ;;  %s959_s26 = smov [#allocation8]  }
  0x82   : > { %p780_p3 = scmp.ne.s32.totalorder %s1156_s18, %s779_s23  ;;  %s783_s8 = sshll.u32 %s959_s26, 4  ;;  %s784_s8 = int_to_ptr.vmem [resolvable:$false] %s783_s8 }
  0x83   : > { %s785_s9 = scalar_lea.vmem %s784_s8, 256  ;;  %p786_p7 = scmp.lt.s32.totalorder %s1156_s18, %s784_s8 }
  0x84   : > { %p781_p5 = pnand %p780_p3, %p1057_p12  ;;  %p787_p8 = scmp.lt.s32.totalorder %s785_s9, %s779_s23 }
  0x86   : > { %p782_p4 = pneg %p781_p5  ;;  %p788_p9 = por %p787_p8, %p786_p7 }
  0x88   : > { %p789_p10 = pnand %p788_p9, %p782_p4 }
  0x8a   : > { %792 = shalt.err (!%p789_p10)
}
  0x8b   : > { %s793_s24 = scalar_lea.hbm %s1153_s14, 128  ;;  %s797_s13 = scalar_lea.hbm %s1274_s3, 256 }
  0x8c   : > { %p794_p11 = scmp.ne.s32.totalorder %s1153_s14, %s793_s24  ;;  %p798_p6 = scmp.lt.u32.totalorder %s1153_s14, %s1274_s3 }
  0x8d   : > { %p799_p2 = scmp.lt.u32.totalorder %s797_s13, %s793_s24  ;;  %p801_p5 = scmp.lt.u32.totalorder %s793_s24, %s1153_s14 }
  0x8e   : > { %p795_p0 = pnand %p794_p11, %p1057_p12 }
  0x8f   : > { %p800_p3 = por %p799_p2, %p798_p6 }
  0x90   : > { %p796_p1 = pneg %p795_p0 }
  0x91   : > { %p802_p4 = por %p801_p5, %p800_p3 }
  0x93   : > { %p803_p7 = pnand %p802_p4, %p796_p1 }
  0x95   : > { %806 = shalt.err (!%p803_p7)
}
  0x96   : > { %630 = dma.vmem_to_hbm [thread:$0]  (%p1057_p12), %s1156_s18, 128, %s1153_s14, %s1164_s20  }
  0x97   : > { %s402_s23 = sshll.u32 %s1117_s7, 4  ;;  %s1193_s25 = scalar_lea.hbm %s1275_s4, %s1147_s12  ;;  %s1195_s23 = int_to_ptr.vmem [resolvable:$true] %s402_s23 }
  0x98   : > { %s428_s24 = sshll.u32 %s1123_s27, 4  ;;  %s379_s11 = scalar_lea.sflag [#allocation4], %s295_s29  ;;  %s429_s24 = int_to_ptr.vmem [resolvable:$true] %s428_s24 }
  0x99   : > { %s807_s13 = scalar_lea.vmem %s1195_s23, 128  ;;  %s960_s14 = smov [#allocation7]  }
  0x9a   : > { %p808_p8 = scmp.ne.s32.totalorder %s1195_s23, %s807_s13  ;;  %s811_s7 = sshll.u32 %s960_s14, 4  ;;  %s812_s7 = int_to_ptr.vmem [resolvable:$false] %s811_s7 }
  0x9b   : > { %s813_s18 = scalar_lea.vmem %s812_s7, 256  ;;  %p814_p11 = scmp.lt.s32.totalorder %s1195_s23, %s812_s7 }
  0x9c   : > { %p809_p9 = pnand %p808_p8, %p1057_p12  ;;  %p815_p0 = scmp.lt.s32.totalorder %s813_s18, %s807_s13 }
  0x9e   : > { %p810_p10 = pneg %p809_p9  ;;  %p816_p1 = por %p815_p0, %p814_p11 }
  0xa0   : > { %p817_p6 = pnand %p816_p1, %p810_p10 }
  0xa2   : > { %820 = shalt.err (!%p817_p6)
}
  0xa3   : > { %s821_s29 = scalar_lea.hbm %s1162_s10, 128  ;;  %s825_s26 = scalar_lea.hbm %s1273_s2, 256 }
  0xa4   : > { %p822_p2 = scmp.ne.s32.totalorder %s1162_s10, %s821_s29  ;;  %p826_p4 = scmp.lt.u32.totalorder %s1162_s10, %s1273_s2 }
  0xa5   : > { %p827_p7 = scmp.lt.u32.totalorder %s825_s26, %s821_s29  ;;  %p829_p9 = scmp.lt.u32.totalorder %s821_s29, %s1162_s10 }
  0xa6   : > { %p823_p3 = pnand %p822_p2, %p1057_p12 }
  0xa7   : > { %p828_p8 = por %p827_p7, %p826_p4 }
  0xa8   : > { %p824_p5 = pneg %p823_p3 }
  0xa9   : > { %p830_p10 = por %p829_p9, %p828_p8 }
  0xab   : > { %p831_p11 = pnand %p830_p10, %p824_p5 }
  0xad   : > { %834 = shalt.err (!%p831_p11)
}
  0xae   : > { %629 = dma.vmem_to_hbm [thread:$0]  (%p1057_p12), %s1195_s23, 128, %s1162_s10, %s379_s11  }
  0xaf   : > { %s835_s13 = scalar_lea.vmem %s429_s24, 128  ;;  %s961_s14 = smov [#allocation10]  }
  0xb0   : > { %p836_p0 = scmp.ne.s32.totalorder %s429_s24, %s835_s13  ;;  %s839_s7 = sshll.u32 %s961_s14, 4  ;;  %s840_s7 = int_to_ptr.vmem [resolvable:$false] %s839_s7 }
  0xb1   : > { %s841_s18 = scalar_lea.vmem %s840_s7, 256  ;;  %p842_p2 = scmp.lt.s32.totalorder %s429_s24, %s840_s7 }
  0xb2   : > { %p837_p1 = pnand %p836_p0, %p1057_p12  ;;  %p843_p3 = scmp.lt.s32.totalorder %s841_s18, %s835_s13 }
  0xb4   : > { %p838_p6 = pneg %p837_p1  ;;  %p844_p5 = por %p843_p3, %p842_p2 }
  0xb6   : > { %p845_p4 = pnand %p844_p5, %p838_p6 }
  0xb8   : > { %848 = shalt.err (!%p845_p4)
}
  0xb9   : > { %s849_s27 = scalar_lea.hbm %s1193_s25, 128  ;;  %s853_s11 = scalar_lea.hbm %s1275_s4, 256 }
  0xba   : > { %p850_p7 = scmp.ne.s32.totalorder %s1193_s25, %s849_s27  ;;  %p854_p10 = scmp.lt.u32.totalorder %s1193_s25, %s1275_s4 }
  0xbb   : > { %p855_p11 = scmp.lt.u32.totalorder %s853_s11, %s849_s27  ;;  %p857_p1 = scmp.lt.u32.totalorder %s849_s27, %s1193_s25 }
  0xbc   : > { %p851_p8 = pnand %p850_p7, %p1057_p12 }
  0xbd   : > { %p856_p0 = por %p855_p11, %p854_p10 }
  0xbe   : > { %p852_p9 = pneg %p851_p8 }
  0xbf   : > { %p858_p6 = por %p857_p1, %p856_p0 }
  0xc1   : > { %p859_p2 = pnand %p858_p6, %p852_p9 }
  0xc3   : > { %862 = shalt.err (!%p859_p2)
}
  0xc4   : > { %631 = dma.vmem_to_hbm [thread:$0]  (%p1057_p12), %s429_s24, 128, %s1193_s25, %s1164_s20  }
  0xc5 PF: > { %s440_s28 = sand.u32 1, %s922_s15   ;;  %p1284_p3 = scmp.ge.s32.totalorder %s950_s22, 2 }
  0xc6   : > { %s441_s26 = scalar_lea.sflag [#allocation4], %s440_s28 }
  0xc7   : > { %p636_p5 = pnand %p1284_p3, %p1061_p13 }
  0xc9   : > { %908 = dma.done.wait (!%p636_p5), %s441_s26, 128  }
  0xca   : > { %910 = vsyncadd (!%p636_p5), %s441_s26, 4294967168  ;;  %s1285_s8 = sadd.s32 4294967294, %s950_s22  }
  0xcb   : > { %s449_s9 = sand.u32 1, %s1285_s8  }
  0xcc   : > { %s450_s13 = scalar_lea.sflag [#allocation9], %s449_s9 }
  0xcd   : > { %912 = dma.done.wait (!%p636_p5), %s450_s13, 256  }
  0xce   : > { %914 = vsyncadd (!%p636_p5), %s450_s13, 4294967040  ;;  %s27_s22 = sadd.s32 1, %s950_s22   ;;  %s1286_s5 = sld [smem:[#allocation15_spill]] }
  0xcf   : > { %p24_p12 = scmp.ge.s32.totalorder %s27_s22, 4   ;;  %s1287_s15 = smov %s926_s16 }
  0xd0   : > { %s1288_s16 = smov %s930_s17  ;;  %s1289_s17 = smov %s1048_s30 }
  0xd1   : > { %s1290_s18 = smov %s938_s19  ;;  %s1261_s19 = smov 0  }
  0xd2   : > { %s1291_s20 = smov %s946_s21  ;;  %26 = sbr.rel (!%p24_p12) target bundleno = 11 (0xb), region = 130 }
  0xd4   : > { %s1292_s21 = smov %s1286_s5 }
  0xd9   :  { %464 = vsyncpa [#allocation3], 1 }
  0xda   :  { %466 = vsyncpa [#allocation3 + $0x1], 1 }
  0xdb   :  { %467 = vsyncpa [#allocation6], 1 }
  0xdc   :  { %469 = vsyncpa [#allocation6 + $0x1], 1 }
  0xdd   :  { %470 = vsyncpa [#allocation4], 1 }
  0xde   :  { %472 = vsyncpa [#allocation4 + $0x1], 1 }
  0xdf   :  { %473 = vsyncpa [#allocation9], 1 }
  0xe0   :  { %475 = vsyncpa [#allocation9 + $0x1], 1 }

</bundles_post_ra>
